<compile_context>
chip_gen: v7x
topology: tpu7x:2x2x1
jax: 0.10.0
libtpu: 0.0.40
codegen_flags: <defaults>
</compile_context>

<pallas_src>
import jax
import jax.numpy as jnp
from jax.experimental import pallas as pl
from jax.experimental.pallas import tpu as pltpu

C_IN = 32
C_OUT = 64
TILE_HW = 512  # pixels (H*W columns) per grid step; multiple of 128


def _convt1x1_sigmoid_kernel(x_ref, wT_ref, b_ref, o_ref):
    # x_ref : (C_IN, TILE_HW)   lane-dense input tile
    # wT_ref: (C_OUT, C_IN)     transposed 1x1 kernel weights
    # b_ref : (C_OUT, 1)        bias column
    # o_ref : (C_OUT, TILE_HW)  lane-dense output tile
    acc = jnp.dot(wT_ref[...], x_ref[...], preferred_element_type=jnp.float32)
    acc = acc + b_ref[...]
    o_ref[...] = jax.nn.sigmoid(acc).astype(o_ref.dtype)


def convt1x1_sigmoid(x_nchw, weight, bias, *, tile_hw=TILE_HW):
    """Fused 1x1 stride-1 ConvTranspose2d + sigmoid.

    x_nchw: (N, C_IN, H, W) f32
    weight: (C_IN, C_OUT) f32   (torch ConvTranspose2d weight squeezed over kH,kW)
    bias:   (C_OUT,) f32
    returns (N, C_OUT, H, W) f32
    """
    n, c, h, w = x_nchw.shape
    assert c == C_IN
    hw = h * w

    # NCHW-native: just flatten the spatial dims (no transpose).
    x3 = x_nchw.reshape(n, C_IN, hw)

    # Pad H*W up to a multiple of the tile (also guarantees lane multiple of 128).
    hw_pad = ((hw + tile_hw - 1) // tile_hw) * tile_hw
    if hw_pad != hw:
        x3 = jnp.pad(x3, ((0, 0), (0, 0), (0, hw_pad - hw)))

    wT = weight.T.astype(x_nchw.dtype)       # (C_OUT, C_IN), tiny
    b2 = bias.reshape(C_OUT, 1).astype(jnp.float32)

    grid = (n, hw_pad // tile_hw)

    cost = pl.CostEstimate(
        flops=2 * n * hw_pad * C_IN * C_OUT,
        transcendentals=n * hw_pad * C_OUT,
        bytes_accessed=(n * hw_pad * (C_IN + C_OUT) * 4
                        + C_IN * C_OUT * 4 + C_OUT * 4),
    )

    out3 = pl.pallas_call(
        _convt1x1_sigmoid_kernel,
        out_shape=jax.ShapeDtypeStruct((n, C_OUT, hw_pad), x_nchw.dtype),
        grid_spec=pltpu.PrefetchScalarGridSpec(
            num_scalar_prefetch=0,
            grid=grid,
            in_specs=[
                # batch dim squeezed out of the kernel view
                pl.BlockSpec((None, C_IN, tile_hw), lambda b, j: (b, 0, j)),
                pl.BlockSpec((C_OUT, C_IN), lambda b, j: (0, 0)),
                pl.BlockSpec((C_OUT, 1), lambda b, j: (0, 0)),
            ],
            out_specs=pl.BlockSpec((None, C_OUT, tile_hw), lambda b, j: (b, 0, j)),
        ),
        compiler_params=pltpu.CompilerParams(
            dimension_semantics=("parallel", "parallel"),
        ),
        cost_estimate=cost,
    )(x3, wT, b2)

    if hw_pad != hw:
        out3 = out3[:, :, :hw]
    return out3.reshape(n, C_OUT, h, w)


if __name__ == "__main__":
    key = jax.random.PRNGKey(0)
    kx, kw, kb = jax.random.split(key, 3)

    # Input consistent with the module: (1, 32, 32, 32), NCHW, f32.
    x = jax.random.normal(kx, (1, 32, 32, 32), dtype=jnp.float32)

    # PyTorch-style uniform init bound for a 1x1 conv-transpose: 1/sqrt(C_in).
    bound = 1.0 / jnp.sqrt(jnp.float32(C_IN))
    weight = jax.random.uniform(kw, (C_IN, C_OUT), jnp.float32, -bound, bound)
    bias = jax.random.uniform(kb, (C_OUT,), jnp.float32, -bound, bound)

    out = convt1x1_sigmoid(x, weight, bias)
    out = jax.block_until_ready(out)

    # Sanity check against plain-JAX reference.
    ref = jax.nn.sigmoid(
        jnp.einsum("nchw,co->nohw", x, weight) + bias[None, :, None, None]
    )
    assert out.shape == (1, C_OUT, 32, 32)
    assert jnp.allclose(out, ref, atol=1e-5, rtol=1e-5)

    print("KERNEL_OK")
</pallas_src>

<mosaic_0001>
module attributes {stable_mosaic.version = 11 : i64} {
  func.func @_convt1x1_sigmoid_kernel(%arg0: i32, %arg1: i32, %arg2: memref<1x32x512xf32, #tpu.memory_space<vmem>>, %arg3: memref<64x32xf32, #tpu.memory_space<vmem>>, %arg4: memref<64x1xf32, #tpu.memory_space<vmem>>, %arg5: memref<1x64x512xf32, #tpu.memory_space<vmem>>) attributes {dimension_semantics = [#tpu.dimension_semantics<parallel>, #tpu.dimension_semantics<parallel>], iteration_bounds = array<i64: 1, 2>, scalar_prefetch = 0 : i64, scratch_operands = 0 : i64, tpu.core_type = #tpu.core_type<tc>, window_params = [{transform_indices = @transform_0, window_bounds = array<i64: 1, 32, 512>}, {pipeline_mode = #tpu.pipeline_mode<synchronous>, transform_indices = @transform_1, window_bounds = array<i64: 64, 32>}, {pipeline_mode = #tpu.pipeline_mode<synchronous>, transform_indices = @transform_2, window_bounds = array<i64: 64, 1>}, {transform_indices = @transform_3, window_bounds = array<i64: 1, 64, 512>}]} {
    %c0 = arith.constant 0 : index
    %c0_0 = arith.constant 0 : index
    %0 = vector.load %arg3[%c0, %c0_0] : memref<64x32xf32, #tpu.memory_space<vmem>>, vector<64x32xf32>
    %c0_1 = arith.constant 0 : index
    %c0_2 = arith.constant 0 : index
    %c0_3 = arith.constant 0 : index
    %1 = vector.load %arg2[%c0_1, %c0_2, %c0_3] : memref<1x32x512xf32, #tpu.memory_space<vmem>>, vector<1x32x512xf32>
    %2 = vector.shape_cast %1 : vector<1x32x512xf32> to vector<32x512xf32>
    %cst = arith.constant dense<0.000000e+00> : vector<64x512xf32>
    %3 = tpu.matmul %0, %2, %cst {dimension_numbers = #tpu.dot_dimension_numbers<[1], [0], [0], [1], [0, 0, 1, 1], [], []>} : vector<64x32xf32>, vector<32x512xf32>, vector<64x512xf32> -> vector<64x512xf32>
    %c0_4 = arith.constant 0 : index
    %c0_5 = arith.constant 0 : index
    %4 = vector.load %arg4[%c0_4, %c0_5] : memref<64x1xf32, #tpu.memory_space<vmem>>, vector<64x1xf32>
    %5 = vector.broadcast %4 : vector<64x1xf32> to vector<64x512xf32>
    %6 = arith.addf %3, %5 : vector<64x512xf32>
    %7 = arith.negf %6 : vector<64x512xf32>
    %8 = math.exp %7 : vector<64x512xf32>
    %cst_6 = arith.constant 1.000000e+00 : f32
    %9 = vector.broadcast %cst_6 : f32 to vector<64x512xf32>
    %10 = arith.addf %9, %8 : vector<64x512xf32>
    %11 = arith.divf %9, %10 : vector<64x512xf32>
    %c0_7 = arith.constant 0 : index
    %c0_8 = arith.constant 0 : index
    %c0_9 = arith.constant 0 : index
    %12 = vector.load %arg5[%c0_7, %c0_8, %c0_9] : memref<1x64x512xf32, #tpu.memory_space<vmem>>, vector<1x64x512xf32>
    %13 = vector.shape_cast %12 : vector<1x64x512xf32> to vector<64x512xf32>
    %14 = vector.shape_cast %11 : vector<64x512xf32> to vector<1x64x512xf32>
    tpu.vector_store %arg5[%c0_7, %c0_8, %c0_9], %14 {strides = array<i32>} : memref<1x64x512xf32, #tpu.memory_space<vmem>>, vector<1x64x512xf32>,
    return
  }
  func.func @transform_0(%arg0: i32, %arg1: i32) -> (i32, i32, i32) {
    %c0_i32 = arith.constant 0 : i32
    %c0_i32_0 = arith.constant 0 : i32
    return %arg0, %c0_i32, %arg1 : i32, i32, i32
  }
  func.func @transform_1(%arg0: i32, %arg1: i32) -> (i32, i32) {
    %c0_i32 = arith.constant 0 : i32
    %c0_i32_0 = arith.constant 0 : i32
    %c0_i32_1 = arith.constant 0 : i32
    return %c0_i32, %c0_i32_0 : i32, i32
  }
  func.func @transform_2(%arg0: i32, %arg1: i32) -> (i32, i32) {
    %c0_i32 = arith.constant 0 : i32
    %c0_i32_0 = arith.constant 0 : i32
    %c0_i32_1 = arith.constant 0 : i32
    return %c0_i32, %c0_i32_0 : i32, i32
  }
  func.func @transform_3(%arg0: i32, %arg1: i32) -> (i32, i32, i32) {
    %c0_i32 = arith.constant 0 : i32
    %c0_i32_0 = arith.constant 0 : i32
    return %arg0, %c0_i32, %arg1 : i32, i32, i32
  }
}

</mosaic_0001>

<bundles_post_ra>
// kernel: tpu_custom_call.1
= control target key start
LH: loop header
LB: loop body
LE: loop exit
PB: predicated region body
PF: predicated region fallthrough
CT: control target
= control target key end

     0   :  { %8 = vsyncpa [#allocation3], 0  ;;  %s1620_s0 = inlined_call_operand.hbm [shape: f32[1,32,1024], index: 0, kind: input, shape index: {}]   ;;  %s1621_s1 = inlined_call_operand.vmem [shape: f32[64,32], index: 1, kind: input, shape index: {}]   ;;  %s1622_s2 = inlined_call_operand.vmem [shape: f32[64,1], index: 2, kind: input, shape index: {}]   ;;  %s1623_s3 = inlined_call_operand.hbm [shape: f32[1,64,1024], index: 3, kind: output, shape index: {}]  }
   0x1   :  { %10 = vsyncpa [#allocation3 + $0x1], 0 }
   0x2   :  { %11 = vsyncpa [#allocation4], 0 }
   0x3   :  { %13 = vsyncpa [#allocation4 + $0x1], 0  ;;  %s1284_s12 = smov 0   ;;  %s1286_s13 = smov 0  }
   0x4   :  { %s1288_s14 = smov 0   ;;  %s1290_s15 = smov 0  }
   0x5   :  { %s1292_s16 = smov 0   ;;  %s1294_s17 = smov 0  }
   0x6 LB: > { %s859_s18 = sadd.s32 4294967295, %s1252_s17   ;;  %s860_s19 = sadd.s32 4294967294, %s1252_s17   ;;  %s1252_s17 = sphi %s1294_s17, %s19_s17   ;;  %s1248_s16 = sphi %s1292_s16, %s1637_s16   ;;  %s1244_s15 = sphi %s1290_s15, %s1636_s15   ;;  %s1240_s14 = sphi %s1288_s14, %s1635_s14   ;;  %s1236_s13 = sphi %s1286_s13, %s1634_s13   ;;  %s1232_s12 = sphi %s1284_s12, %s1633_s12  }
   0x7   : > { %s28_s20 = sadd.s32 1, %s1248_s16  ;;  %s40_s21 = sadd.s32 1, %s1240_s14 }
   0x8   : > { %p29_p0 = scmp.ge.s32.totalorder %s28_s20, 2  ;;  %p47_p1 = scmp.ne.s32.totalorder %s1240_s14, %s1236_s13 }
   0x9   : > { %p48_p2 = scmp.eq.s32.totalorder %s1252_s17, 0  ;;  %p53_p3 = scmp.ne.s32.totalorder %s1236_s13, %s1232_s12 }
   0xa   : > { %s1639_s20 = smov (%p29_p0, %s28_s20), 0  ;;  %p54_p5 = scmp.eq.s32.totalorder %s859_s18, 0 }
   0xb   : > { %p1325_p4 = por %p48_p2, %p47_p1  ;;  %s36_s23 = ssub.s32 %s1248_s16, %s1639_s20 }
   0xc   : > { %p121_p6 = scmp.eq.s32.totalorder %s859_s18, 1  ;;  %p38_p7 = scmp.eq.s32.totalorder %s36_s23, 0 }
   0xd   : > { %p1331_p8 = por %p54_p5, %p53_p3  ;;  %p127_p10 = scmp.eq.s32.totalorder %s860_s19, 1 }
   0xe   : > { %p1335_p9 = por %p121_p6, %p47_p1  ;;  %p952_p13 = scmp.lt.s32.totalorder %s1252_s17, 2 }
   0xf   : > { %s1340_s26 = scalar_select %p38_p7, %s1240_s14, %s40_s21  }
  0x10   : > { %s1627_s25 = scalar_select %p1335_p9, 1, 0 }
  0x11   : > { %p1342_p11 = por %p127_p10, %p53_p3  ;;  %s153_s28 = sand.u32 1, %s1240_s14  }
  0x12   : > { %s863_s29 = sshll.u32 %s153_s28, 7  ;;  %s922_s30 = sshll.u32 %s1248_s16, 9 }
  0x13   : > { %s1628_s27 = scalar_select %p1342_p11, 1, 0 }
  0x14   : > { %s1353_s6 = scalar_lea.hbm %s1620_s0, %s922_s30  ;;  %s157_s7 = scalar_lea.vmem [#allocation2], %s863_s29 }
  0x15   : > { %s166_s8 = sshll.u32 %s157_s7, 4  ;;  %p1359_p0 = pnand %p952_p13, %p1325_p4  ;;  %s1355_s8 = int_to_ptr.vmem [resolvable:$true] %s166_s8 }
  0x16   : > { %s1363_s10 = scalar_lea.sflag [#allocation3], %s153_s28  ;;  %s1140_s11 = scalar_lea.hbm %s1353_s6, 2048 }
  0x17   : > { %p1141_p1 = scmp.ne.s32.totalorder %s1353_s6, %s1140_s11  ;;  %p1142_p2 = pneg %p1359_p0 }
  0x18   : > { %s1145_s21 = scalar_lea.hbm %s1620_s0, 4096  ;;  %p1146_p4 = scmp.lt.u32.totalorder %s1353_s6, %s1620_s0 }
  0x19   : > { %p1143_p3 = pnand %p1142_p2, %p1141_p1  ;;  %p1147_p6 = scmp.lt.u32.totalorder %s1145_s21, %s1140_s11 }
  0x1a   : > { %p1149_p10 = scmp.lt.u32.totalorder %s1140_s11, %s1353_s6 }
  0x1b   : > { %p1144_p5 = pneg %p1143_p3  ;;  %p1148_p7 = por %p1147_p6, %p1146_p4 }
  0x1d   : > { %p1150_p13 = por %p1149_p10, %p1148_p7 }
  0x1f   : > { %p1151_p12 = pnand %p1150_p13, %p1144_p5 }
  0x21   : > { %1154 = shalt.err (!%p1151_p12)
}
  0x22   : > { %s1155_s28 = scalar_lea.vmem %s1355_s8, 2048  ;;  %s1254_s29 = smov [#allocation2]  }
  0x23   : > { %p1156_p1 = scmp.ne.s32.totalorder %s1355_s8, %s1155_s28  ;;  %s1160_s30 = sshll.u32 %s1254_s29, 4  ;;  %s1161_s30 = int_to_ptr.vmem [resolvable:$false] %s1160_s30 }
  0x24   : > { %s1162_s4 = scalar_lea.vmem %s1161_s30, 4096  ;;  %p1163_p9 = scmp.lt.s32.totalorder %s1355_s8, %s1161_s30 }
  0x25   : > { %p1158_p3 = pnand %p1156_p1, %p1142_p2  ;;  %p1164_p4 = scmp.lt.s32.totalorder %s1162_s4, %s1155_s28 }
  0x27   : > { %p1159_p11 = pneg %p1158_p3  ;;  %p1165_p6 = por %p1164_p4, %p1163_p9 }
  0x29   : > { %p1166_p7 = pnand %p1165_p6, %p1159_p11 }
  0x2b   : > { %1169 = shalt.err (!%p1166_p7)
}
  0x2c   : > { %s1255_s5 = smov 1024   ;;  %s1256_s7 = smov 512  }
  0x2d   : > { %s1257_s11 = smov 32   ;;  %p866_p12 = scmp.ge.s32.totalorder %s1252_s17, 1 }
  0x2e   : > { %947 = dma.hbm_to_vmem [thread:$0]  (!%p1359_p0), %s1353_s6, 2048, %s1355_s8, %s1363_s10, %s1255_s5, %s1256_s7, %s1257_s11  }
  0x2f   : > { %p174_p2 = scmp.lt.s32.totalorder %s1252_s17, 3 }
  0x31   : > { %p175_p5 = pnand %p866_p12, %p174_p2 }
  0x32   : > { %s1394_s18 = sand.u32 (!%p175_p5), 1, %s1236_s13  }
  0x33   : > { %178 = sbr.rel (%p175_p5) target bundleno = 384 (0x180), region = 32  ;;  %s867_s19 = sshll.u32 (!%p175_p5), %s1394_s18, 7 }
  0x34   : > { %s181_s21 = scalar_lea.sflag (!%p175_p5), [#allocation3], %s1394_s18  ;;  %s1398_s22 = scalar_lea.vmem (!%p175_p5), [#allocation2], %s867_s19 }
  0x3a   : > { %1223 = dma.done.wait (%p1331_p8), %s181_s21, 2048  }
  0x3b   : > { %1225 = vsyncadd (%p1331_p8), %s181_s21, 4294965248  ;;  %v1258_v0 = vmov 0.0   ;;  %v1259_v1 = vmov 0   ;;  %v218_v2 = vld [vmem:[%s1398_s22 + $0x8] sm:$0xff]  ;;  %v220_v4 = vld [vmem:[%s1398_s22 + $0x18] sm:$0xff]  ;;  %vm281_vm0 = vcmask 261120  }
  0x3c   : > { %370 = vmatprep.mubr.f32.mxu0 %v1258_v0  ;;  %483 = vmatprep.mubr.f32.mxu1 %v1258_v0  ;;  %v222_v3 = vld [vmem:[%s1398_s22 + $0x28] sm:$0xff]  ;;  %v224_v6 = vld [vmem:[%s1398_s22 + $0x38] sm:$0xff]  ;;  %v217_v7 = vld [vmem:[%s1398_s22] sm:$0xff]  ;;  %s868_s24 = sshll.u32 %s1394_s18, 8  ;;  %s923_s8 = sshll.u32 %s1244_s15, 9 }
  0x3d   : > { %1010 = vset.pattern.permute.xlu0 %v1259_v1  ;;  %1011 = vset.pattern.permute.xlu1 %v1259_v1  ;;  %v924_v5 = vpack.c.bf16 %v222_v3, %v218_v2  ;;  %v221_v8 = vld [vmem:[%s1398_s22 + $0x20] sm:$0xff]  ;;  %v932_v9 = vpack.c.bf16 %v224_v6, %v220_v4  ;;  %v219_v11 = vld [vmem:[%s1398_s22 + $0x10] sm:$0xff]  ;;  %v226_v13 = vld [vmem:[%s1398_s22 + $0x48] sm:$0xff]  ;;  %s1511_s6 = scalar_lea.vmem [#allocation5], %s868_s24  ;;  %s1565_s28 = scalar_lea.hbm %s1623_s3, %s923_s8 }
  0x3e   : > { %v926_v10 = vpack.c.bf16 %v221_v8, %v217_v7  ;;  %v223_v12 = vld [vmem:[%s1398_s22 + $0x30] sm:$0xff]  ;;  %v230_v15 = vld [vmem:[%s1398_s22 + $0x68] sm:$0xff]  ;;  %v228_v16 = vld [vmem:[%s1398_s22 + $0x58] sm:$0xff]  ;;  %s772_s9 = sshll.u32 %s1511_s6, 4  ;;  %s757_s15 = scalar_lea.sflag [#allocation4], %s1394_s18  ;;  %s1568_s9 = int_to_ptr.vmem [resolvable:$true] %s772_s9 }
  0x3f   : > { %925 = vmatprep.subr.bf16.mxu0 %v924_v5  ;;  %v934_v14 = vpack.c.bf16 %v223_v12, %v219_v11  ;;  %v232_v17 = vld [vmem:[%s1398_s22 + $0x78] sm:$0xff]  ;;  %933 = vmatprep.subr.bf16.mxu1 %v932_v9  ;;  %v928_v18 = vpack.c.bf16 %v230_v15, %v226_v13  ;;  %v225_v20 = vld [vmem:[%s1398_s22 + $0x40] sm:$0xff]  ;;  %v227_v22 = vld [vmem:[%s1398_s22 + $0x50] sm:$0xff]  ;;  %s1170_s29 = scalar_lea.vmem %s1568_s9, 4096  ;;  %p1630_p9 = scmp.ne.s32.totalorder %s1627_s25, 0 }
  0x40   : > { %927 = vmatpush1.bf16.msra.mxu0 %v926_v10  ;;  %v936_v19 = vpack.c.bf16 %v232_v17, %v228_v16  ;;  %v229_v21 = vld [vmem:[%s1398_s22 + $0x60] sm:$0xff]  ;;  %v231_v24 = vld [vmem:[%s1398_s22 + $0x70] sm:$0xff]  ;;  %v234_v29 = vld [vmem:[%s1622_s2 + $0x8] sm:$0xff]  ;;  %p1171_p8 = scmp.ne.s32.totalorder %s1568_s9, %s1170_s29  ;;  %s1260_s30 = smov [#allocation5]  }
  0x41   : > { %935 = vmatpush1.bf16.msra.mxu1 %v934_v14  ;;  %v930_v23 = vpack.c.bf16 %v229_v21, %v225_v20  ;;  %929 = vmatprep.subr.bf16.mxu0 %v928_v18  ;;  %v938_v25 = vpack.c.bf16 %v231_v24, %v227_v22  ;;  %v209_v26 = vld [vmem:[%s1621_s1] sm:$0xff]  ;;  %v235_v28 = vld [vmem:[%s1622_s2 + $0x10] sm:$0xff]  ;;  %v236_v30 = vld [vmem:[%s1622_s2 + $0x18] sm:$0xff]  ;;  %s1174_s4 = sshll.u32 %s1260_s30, 4  ;;  %s1175_s4 = int_to_ptr.vmem [resolvable:$false] %s1174_s4 }
  0x42   : > { %937 = vmatprep.subr.bf16.mxu1 %v936_v19  ;;  %v233_v27 = vld [vmem:[%s1622_s2] sm:$0xff]  ;;  %253 = vperm.xlu1 %1011, %v235_v28   ;;  %v210_v31 = vld [vmem:[%s1621_s1 + $0x8] sm:$0xff]  ;;  %v211_v34 = vld [vmem:[%s1621_s1 + $0x10] sm:$0xff]  ;;  %p1172_p11 = pnand %p1171_p8, %p1630_p9  ;;  %s1176_s5 = scalar_lea.vmem %s1175_s4, 8192 }
  0x43   : > { %243 = vperm.xlu0 %1010, %v233_v27   ;;  %v237_v32 = vld [vmem:[%s1622_s2 + $0x20] sm:$0xff]  ;;  %v238_v33 = vld [vmem:[%s1622_s2 + $0x28] sm:$0xff]  ;;  %v239_v35 = vld [vmem:[%s1622_s2 + $0x30] sm:$0xff]  ;;  %p1177_p10 = scmp.lt.s32.totalorder %s1568_s9, %s1175_s4  ;;  %p1178_p13 = scmp.lt.s32.totalorder %s1176_s5, %s1170_s29 }
  0x44   : > { %931 = vmatpush1.bf16.msra.mxu0 %v930_v23  ;;  %v240_v36 = vld [vmem:[%s1622_s2 + $0x38] sm:$0xff]  ;;  %v213_v38 = vld [vmem:[%s1621_s1 + $0x20] sm:$0xff]  ;;  %v214_v39 = vld [vmem:[%s1621_s1 + $0x28] sm:$0xff]  ;;  %p1173_p0 = pneg %p1172_p11 }
  0x45   : > { %939 = vmatpush1.bf16.msra.mxu1 %v938_v25  ;;  %v212_v37 = vld [vmem:[%s1621_s1 + $0x18] sm:$0xff]  ;;  %v215_v40 = vld [vmem:[%s1621_s1 + $0x30] sm:$0xff]  ;;  %p1179_p1 = por %p1178_p13, %p1177_p10 }
  0x46   : > { %258 = vperm.xlu1 %1011, %v236_v30   ;;  %v216_v41 = vld [vmem:[%s1621_s1 + $0x38] sm:$0xff] }
  0x47   : > { %869 = vmatmul.mubr.msk.f32.vlgmr.msra.gmra.mrb[0].mxu0 %vm281_vm0, %v209_v26  ;;  %248 = vperm.xlu0 %1010, %v234_v29   ;;  %p1180_p3 = pnand %p1179_p1, %p1173_p0 }
  0x48   : > { %877 = vmatmul.mubr.msk.f32.vlgmr.msra.gmra.mrb[0].mxu1 %vm281_vm0, %v209_v26  ;;  %376 = vmatprep.mubr.f32.mxu0 %v1258_v0 }
  0x49   : > { %489 = vmatprep.mubr.f32.mxu1 %v1258_v0 }
  0x4a   : > { %268 = vperm.xlu1 %1011, %v238_v33  }
  0x4b   : > { %870 = vmatmul.mubr.msk.f32.gmra.mrb[2].mxu0 %vm281_vm0, %v210_v31  ;;  %263 = vperm.xlu0 %1010, %v237_v32  }
  0x4c   : > { %878 = vmatmul.mubr.msk.f32.gmra.mrb[2].mxu1 %vm281_vm0, %v210_v31  ;;  %382 = vmatprep.mubr.f32.mxu0 %v1258_v0 }
  0x4d   : > { %495 = vmatprep.mubr.f32.mxu1 %v1258_v0 }
  0x4e   : > { %278 = vperm.xlu1 %1011, %v240_v36  }
  0x4f   : > { %871 = vmatmul.mubr.msk.f32.gmra.mrb[4].mxu0 %vm281_vm0, %v211_v34  ;;  %273 = vperm.xlu0 %1010, %v239_v35  }
  0x50   : > { %879 = vmatmul.mubr.msk.f32.gmra.mrb[4].mxu1 %vm281_vm0, %v211_v34  ;;  %388 = vmatprep.mubr.f32.mxu0 %v1258_v0 }
  0x51   : > { %501 = vmatprep.mubr.f32.mxu1 %v1258_v0 }
  0x53   : > { %872 = vmatmul.mubr.msk.f32.gmra.mrb[6].mxu0 %vm281_vm0, %v212_v37 }
  0x54   : > { %880 = vmatmul.mubr.msk.f32.gmra.mrb[6].mxu1 %vm281_vm0, %v212_v37  ;;  %394 = vmatprep.mubr.f32.mxu0 %v1258_v0 }
  0x55   : > { %507 = vmatprep.mubr.f32.mxu1 %v1258_v0 }
  0x57   : > { %873 = vmatmul.mubr.msk.f32.gmra.mrb[8].mxu0 %vm281_vm0, %v213_v38 }
  0x58   : > { %881 = vmatmul.mubr.msk.f32.gmra.mrb[8].mxu1 %vm281_vm0, %v213_v38  ;;  %400 = vmatprep.mubr.f32.mxu0 %v1258_v0 }
  0x59   : > { %513 = vmatprep.mubr.f32.mxu1 %v1258_v0 }
  0x5b   : > { %874 = vmatmul.mubr.msk.f32.gmra.mrb[10].mxu0 %vm281_vm0, %v214_v39 }
  0x5c   : > { %882 = vmatmul.mubr.msk.f32.gmra.mrb[10].mxu1 %vm281_vm0, %v214_v39  ;;  %406 = vmatprep.mubr.f32.mxu0 %v1258_v0 }
  0x5d   : > { %519 = vmatprep.mubr.f32.mxu1 %v1258_v0 }
  0x5f   : > { %875 = vmatmul.mubr.msk.f32.gmra.mrb[12].mxu0 %vm281_vm0, %v215_v40 }
  0x60   : > { %883 = vmatmul.mubr.msk.f32.gmra.mrb[12].mxu1 %vm281_vm0, %v215_v40  ;;  %412 = vmatprep.mubr.f32.mxu0 %v1258_v0 }
  0x61   : > { %525 = vmatprep.mubr.f32.mxu1 %v1258_v0 }
  0x63   : > { %876 = vmatmul.mubr.msk.f32.gmra.mrb[14].mxu0 %vm281_vm0, %v216_v41 }
  0x64   : > { %884 = vmatmul.mubr.msk.f32.gmra.mrb[14].mxu1 %vm281_vm0, %v216_v41 }
  0xc1   : > { %v254_v61 = vpop.permute.xlu1 %253 }
  0xc2   : > { %v244_v42 = vpop.permute.xlu0 %243 }
  0xc5   : > { %v259_v15 = vpop.permute.xlu1 %258 }
  0xc6   : > { %v249_v50 = vpop.permute.xlu0 %248 }
 0x11a   : > { %v372_v43 = vpop.f32.mrb[0].mxu0 }
 0x11b   : > { %v373_v44 = vadd.f32 %v372_v43, %v244_v42  ;;  %v485_v45 = vpop.f32.mrb[0].mxu1  ;;  %v374_v46 = vpop.f32.mrb[1].mxu0 }
 0x11c   : > { %v486_v47 = vadd.f32 %v485_v45, %v244_v42  ;;  %v375_v48 = vadd.f32 %v374_v46, %v244_v42  ;;  %v487_v49 = vpop.f32.mrb[1].mxu1 }
 0x11d   : > { %v885_v51 = vmul.f32 -1.442695, %v373_v44  ;;  %v488_v52 = vadd.f32 %v487_v49, %v244_v42 }
 0x11e   : > { %v887_v53 = vmul.f32 -1.442695, %v486_v47  ;;  %v886_v54 = vmul.f32 -1.442695, %v375_v48  ;;  %v378_v55 = vpop.f32.mrb[2].mxu0 }
 0x11f   : > { %1012 = vpow2.f32 %v885_v51  ;;  %v888_v56 = vmul.f32 -1.442695, %v488_v52  ;;  %v379_v57 = vadd.f32 %v378_v55, %v249_v50  ;;  %v491_v58 = vpop.f32.mrb[2].mxu1  ;;  %v380_v59 = vpop.f32.mrb[3].mxu0 }
 0x120   : > { %1014 = vpow2.f32 %v887_v53  ;;  %v492_v60 = vadd.f32 %v491_v58, %v249_v50  ;;  %v381_v62 = vadd.f32 %v380_v59, %v249_v50  ;;  %v493_v63 = vpop.f32.mrb[3].mxu1  ;;  %v264_v52 = vpop.permute.xlu0 %263 }
 0x121   : > { %1016 = vpow2.f32 %v886_v54  ;;  %v889_v0 = vmul.f32 -1.442695, %v379_v57  ;;  %v494_v1 = vadd.f32 %v493_v63, %v249_v50 }
 0x122   : > { %1018 = vpow2.f32 %v888_v56  ;;  %v891_v2 = vmul.f32 -1.442695, %v492_v60  ;;  %v890_v3 = vmul.f32 -1.442695, %v381_v62  ;;  %v384_v4 = vpop.f32.mrb[4].mxu0 }
 0x123   : > { %1020 = vpow2.f32 %v889_v0  ;;  %v892_v5 = vmul.f32 -1.442695, %v494_v1  ;;  %v385_v6 = vadd.f32 %v384_v4, %v254_v61  ;;  %v497_v7 = vpop.f32.mrb[4].mxu1  ;;  %v386_v8 = vpop.f32.mrb[5].mxu0 }
 0x124   : > { %1022 = vpow2.f32 %v891_v2  ;;  %v498_v9 = vadd.f32 %v497_v7, %v254_v61  ;;  %v387_v10 = vadd.f32 %v386_v8, %v254_v61  ;;  %v499_v11 = vpop.f32.mrb[5].mxu1 }
 0x125   : > { %1024 = vpow2.f32 %v890_v3  ;;  %v893_v12 = vmul.f32 -1.442695, %v385_v6  ;;  %v500_v13 = vadd.f32 %v499_v11, %v254_v61  ;;  %v269_v6 = vpop.permute.xlu1 %268 }
 0x126   : > { %1026 = vpow2.f32 %v892_v5  ;;  %v895_v14 = vmul.f32 -1.442695, %v498_v9  ;;  %v894_v16 = vmul.f32 -1.442695, %v387_v10  ;;  %v390_v17 = vpop.f32.mrb[6].mxu0 }
 0x127   : > { %1028 = vpow2.f32 %v893_v12  ;;  %v896_v18 = vmul.f32 -1.442695, %v500_v13  ;;  %v391_v19 = vadd.f32 %v390_v17, %v259_v15  ;;  %v503_v20 = vpop.f32.mrb[6].mxu1  ;;  %v392_v21 = vpop.f32.mrb[7].mxu0 }
 0x128   : > { %1030 = vpow2.f32 %v895_v14  ;;  %v505_v22 = vpop.f32.mrb[7].mxu1  ;;  %v504_v49 = vadd.f32 %v503_v20, %v259_v15  ;;  %v393_v53 = vadd.f32 %v392_v21, %v259_v15 }
 0x129   : > { %v1013_v23 = vpop.eup %1012  ;;  %1032 = vpow2.f32 %v894_v16  ;;  %v897_v24 = vmul.f32 -1.442695, %v391_v19  ;;  %v506_v57 = vadd.f32 %v505_v22, %v259_v15 }
 0x12a   : > { %v1015_v25 = vpop.eup %1014  ;;  %v628_v26 = vadd.f32 1.0, %v1013_v23  ;;  %1034 = vpow2.f32 %v896_v18  ;;  %v396_v27 = vpop.f32.mrb[8].mxu0  ;;  %v899_v2 = vmul.f32 -1.442695, %v504_v49  ;;  %v898_v7 = vmul.f32 -1.442695, %v393_v53 }
 0x12b   : > { %v1017_v28 = vpop.eup %1016  ;;  %v630_v29 = vadd.f32 1.0, %v1015_v25  ;;  %1036 = vpow2.f32 %v897_v24  ;;  %v509_v30 = vpop.f32.mrb[8].mxu1  ;;  %v397_v62 = vadd.f32 %v396_v27, %v264_v52  ;;  %v900_v11 = vmul.f32 -1.442695, %v506_v57 }
 0x12c   : > { %v398_v31 = vpop.f32.mrb[9].mxu0  ;;  %v1019_v32 = vpop.eup %1018  ;;  %1038 = vrcp.f32 %v628_v26  ;;  %v629_v33 = vadd.f32 1.0, %v1017_v28  ;;  %v510_v3 = vadd.f32 %v509_v30, %v264_v52 }
 0x12d   : > { %v511_v34 = vpop.f32.mrb[9].mxu1  ;;  %v1021_v35 = vpop.eup %1020  ;;  %1040 = vrcp.f32 %v630_v29  ;;  %v631_v36 = vadd.f32 1.0, %v1019_v32  ;;  %v399_v8 = vadd.f32 %v398_v31, %v264_v52  ;;  %v901_v16 = vmul.f32 -1.442695, %v397_v62 }
 0x12e   : > { %v1023_v37 = vpop.eup %1022  ;;  %1042 = vrcp.f32 %v629_v33  ;;  %v632_v38 = vadd.f32 1.0, %v1021_v35  ;;  %v402_v39 = vpop.f32.mrb[10].mxu0  ;;  %v512_v12 = vadd.f32 %v511_v34, %v264_v52  ;;  %v903_v20 = vmul.f32 -1.442695, %v510_v3 }
 0x12f   : > { %v1025_v40 = vpop.eup %1024  ;;  %1044 = vrcp.f32 %v631_v36  ;;  %v634_v41 = vadd.f32 1.0, %v1023_v37  ;;  %v515_v42 = vpop.f32.mrb[10].mxu1  ;;  %v403_v17 = vadd.f32 %v402_v39, %v269_v6  ;;  %v902_v23 = vmul.f32 -1.442695, %v399_v8 }
 0x130   : > { %v404_v43 = vpop.f32.mrb[11].mxu0  ;;  %v1027_v44 = vpop.eup %1026  ;;  %1046 = vrcp.f32 %v632_v38  ;;  %v633_v45 = vadd.f32 1.0, %v1025_v40  ;;  %v516_v21 = vadd.f32 %v515_v42, %v269_v6  ;;  %v904_v27 = vmul.f32 -1.442695, %v512_v12 }
 0x131   : > { %v1500_v46 = vpop.f32.mrb[11].mxu1  ;;  %v1029_v47 = vpop.eup %1028  ;;  %1048 = vrcp.f32 %v634_v41  ;;  %v635_v48 = vadd.f32 1.0, %v1027_v44  ;;  %v405_v24 = vadd.f32 %v404_v43, %v269_v6  ;;  %v905_v30 = vmul.f32 -1.442695, %v403_v17 }
 0x132   : > { %v1031_v50 = vpop.eup %1030  ;;  %1050 = vrcp.f32 %v633_v45  ;;  %v636_v51 = vadd.f32 1.0, %v1029_v47  ;;  %v408_v54 = vpop.f32.mrb[12].mxu0  ;;  %v518_v28 = vadd.f32 %v1500_v46, %v269_v6  ;;  %v907_v33 = vmul.f32 -1.442695, %v516_v21 }
 0x133   : > { %v1033_v55 = vpop.eup %1032  ;;  %1052 = vrcp.f32 %v635_v48  ;;  %v638_v56 = vadd.f32 1.0, %v1031_v50  ;;  %v521_v58 = vpop.f32.mrb[12].mxu1  ;;  %v906_v36 = vmul.f32 -1.442695, %v405_v24 }
 0x134   : > { %v1503_v59 = vpop.f32.mrb[13].mxu0  ;;  %v1035_v60 = vpop.eup %1034  ;;  %1054 = vrcp.f32 %v636_v51  ;;  %v637_v61 = vadd.f32 1.0, %v1033_v55  ;;  %v908_v38 = vmul.f32 -1.442695, %v518_v28 }
 0x135   : > { %v1505_v63 = vpop.f32.mrb[13].mxu1  ;;  %v1037_v0 = vpop.eup %1036  ;;  %1056 = vrcp.f32 %v638_v56  ;;  %v639_v1 = vadd.f32 1.0, %v1035_v60 }
 0x136   : > { %v1039_v4 = vpop.eup %1038  ;;  %1058 = vrcp.f32 %v637_v61  ;;  %v640_v5 = vadd.f32 1.0, %v1037_v0  ;;  %v1507_v9 = vpop.f32.mrb[14].mxu0 }
 0x137   : > { %v1041_v10 = vpop.eup %1040  ;;  %724 = vst [vmem:[%s1511_s6] sm:$0xff] %v1039_v4  ;;  %1060 = vrcp.f32 %v639_v1  ;;  %v1514_v13 = vpop.f32.mrb[14].mxu1 }
 0x138   : > { %v1516_v14 = vpop.f32.mrb[15].mxu0  ;;  %v1043_v15 = vpop.eup %1042  ;;  %726 = vst [vmem:[%s1511_s6 + $0x10] sm:$0xff] %v1041_v10  ;;  %1062 = vrcp.f32 %v640_v5 }
 0x139   : > { %v1519_v18 = vpop.f32.mrb[15].mxu1  ;;  %v1045_v19 = vpop.eup %1044  ;;  %725 = vst [vmem:[%s1511_s6 + $0x8] sm:$0xff] %v1043_v15  ;;  %1064 = vpow2.f32 %v899_v2 }
 0x13a   : > { %v1047_v22 = vpop.eup %1046  ;;  %727 = vst [vmem:[%s1511_s6 + $0x18] sm:$0xff] %v1045_v19  ;;  %1066 = vpow2.f32 %v898_v7  ;;  %v1524_v26 = vpop.permute.xlu0 %273 }
 0x13b   : > { %v1049_v25 = vpop.eup %1048  ;;  %728 = vst [vmem:[%s1511_s6 + $0x20] sm:$0xff] %v1047_v22  ;;  %1068 = vpow2.f32 %v900_v11  ;;  %v409_v31 = vadd.f32 %v408_v54, %v1524_v26  ;;  %v522_v34 = vadd.f32 %v521_v58, %v1524_v26  ;;  %v411_v62 = vadd.f32 %v1503_v59, %v1524_v26  ;;  %v279_v1 = vpop.permute.xlu1 %278 }
 0x13c   : > { %v1051_v29 = vpop.eup %1050  ;;  %730 = vst [vmem:[%s1511_s6 + $0x30] sm:$0xff] %v1049_v25  ;;  %1070 = vpow2.f32 %v901_v16  ;;  %v524_v3 = vadd.f32 %v1505_v63, %v1524_v26  ;;  %v415_v6 = vadd.f32 %v1507_v9, %v279_v1  ;;  %v528_v10 = vadd.f32 %v1514_v13, %v279_v1 }
 0x13d   : > { %v1053_v32 = vpop.eup %1052  ;;  %729 = vst [vmem:[%s1511_s6 + $0x28] sm:$0xff] %v1051_v29  ;;  %1072 = vpow2.f32 %v903_v20  ;;  %v909_v40 = vmul.f32 -1.442695, %v409_v31  ;;  %v911_v42 = vmul.f32 -1.442695, %v522_v34  ;;  %v417_v15 = vadd.f32 %v1516_v14, %v279_v1 }
 0x13e   : > { %v1055_v35 = vpop.eup %1054  ;;  %731 = vst [vmem:[%s1511_s6 + $0x38] sm:$0xff] %v1053_v32  ;;  %1074 = vpow2.f32 %v902_v23  ;;  %v910_v12 = vmul.f32 -1.442695, %v411_v62  ;;  %v912_v17 = vmul.f32 -1.442695, %v524_v3  ;;  %v530_v9 = vadd.f32 %v1519_v18, %v279_v1 }
 0x13f   : > { %v1057_v37 = vpop.eup %1056  ;;  %732 = vst [vmem:[%s1511_s6 + $0x40] sm:$0xff] %v1055_v35  ;;  %1076 = vpow2.f32 %v904_v27  ;;  %v913_v13 = vmul.f32 -1.442695, %v415_v6  ;;  %v915_v21 = vmul.f32 -1.442695, %v528_v10 }
 0x140   : > { %v1059_v39 = vpop.eup %1058  ;;  %734 = vst [vmem:[%s1511_s6 + $0x50] sm:$0xff] %v1057_v37  ;;  %1078 = vpow2.f32 %v905_v30  ;;  %v914_v14 = vmul.f32 -1.442695, %v417_v15  ;;  %v916_v18 = vmul.f32 -1.442695, %v530_v9 }
 0x141   : > { %v1061_v41 = vpop.eup %1060  ;;  %733 = vst [vmem:[%s1511_s6 + $0x48] sm:$0xff] %v1059_v39  ;;  %1080 = vpow2.f32 %v907_v33 }
 0x142   : > { %v1063_v43 = vpop.eup %1062  ;;  %735 = vst [vmem:[%s1511_s6 + $0x58] sm:$0xff] %v1061_v41  ;;  %1082 = vpow2.f32 %v906_v36 }
 0x143   : > { %v1065_v44 = vpop.eup %1064  ;;  %736 = vst [vmem:[%s1511_s6 + $0x60] sm:$0xff] %v1063_v43  ;;  %1084 = vpow2.f32 %v908_v38 }
 0x144   : > { %v1067_v45 = vpop.eup %1066  ;;  %v642_v46 = vadd.f32 1.0, %v1065_v44  ;;  %1086 = vpow2.f32 %v909_v40 }
 0x145   : > { %v1069_v47 = vpop.eup %1068  ;;  %v641_v48 = vadd.f32 1.0, %v1067_v45  ;;  %1088 = vpow2.f32 %v911_v42 }
 0x146   : > { %v1071_v49 = vpop.eup %1070  ;;  %1090 = vrcp.f32 %v642_v46  ;;  %v643_v50 = vadd.f32 1.0, %v1069_v47 }
 0x147   : > { %v1073_v51 = vpop.eup %1072  ;;  %1092 = vrcp.f32 %v641_v48  ;;  %v644_v52 = vadd.f32 1.0, %v1071_v49 }
 0x148   : > { %v1075_v53 = vpop.eup %1074  ;;  %1094 = vrcp.f32 %v643_v50  ;;  %v646_v54 = vadd.f32 1.0, %v1073_v51 }
 0x149   : > { %v1077_v55 = vpop.eup %1076  ;;  %1096 = vrcp.f32 %v644_v52  ;;  %v645_v56 = vadd.f32 1.0, %v1075_v53 }
 0x14a   : > { %v1079_v57 = vpop.eup %1078  ;;  %1098 = vrcp.f32 %v646_v54  ;;  %v647_v58 = vadd.f32 1.0, %v1077_v55 }
 0x14b   : > { %v1081_v60 = vpop.eup %1080  ;;  %1100 = vrcp.f32 %v645_v56  ;;  %v648_v61 = vadd.f32 1.0, %v1079_v57 }
 0x14c   : > { %v1083_v0 = vpop.eup %1082  ;;  %1102 = vrcp.f32 %v647_v58  ;;  %v650_v2 = vadd.f32 1.0, %v1081_v60 }
 0x14d   : > { %v1085_v4 = vpop.eup %1084  ;;  %1104 = vrcp.f32 %v648_v61  ;;  %v649_v5 = vadd.f32 1.0, %v1083_v0 }
 0x14e   : > { %v1087_v7 = vpop.eup %1086  ;;  %1106 = vrcp.f32 %v650_v2  ;;  %v651_v8 = vadd.f32 1.0, %v1085_v4 }
 0x14f   : > { %v1089_v59 = vpop.eup %1088  ;;  %1108 = vrcp.f32 %v649_v5  ;;  %v652_v11 = vadd.f32 1.0, %v1087_v7 }
 0x150   : > { %v1091_v63 = vpop.eup %1090  ;;  %1110 = vrcp.f32 %v651_v8  ;;  %v654_v16 = vadd.f32 1.0, %v1089_v59 }
 0x151   : > { %v1093_v19 = vpop.eup %1092  ;;  %738 = vst [vmem:[%s1511_s6 + $0x70] sm:$0xff] %v1091_v63  ;;  %1112 = vrcp.f32 %v652_v11 }
 0x152   : > { %v1095_v20 = vpop.eup %1094  ;;  %737 = vst [vmem:[%s1511_s6 + $0x68] sm:$0xff] %v1093_v19  ;;  %1114 = vrcp.f32 %v654_v16 }
 0x153   : > { %v1097_v22 = vpop.eup %1096  ;;  %739 = vst [vmem:[%s1511_s6 + $0x78] sm:$0xff] %v1095_v20  ;;  %1116 = vpow2.f32 %v910_v12 }
 0x154   : > { %v1099_v23 = vpop.eup %1098  ;;  %740 = vst [vmem:[%s1511_s6 + $0x80] sm:$0xff] %v1097_v22  ;;  %1118 = vpow2.f32 %v912_v17 }
 0x155   : > { %v1101_v24 = vpop.eup %1100  ;;  %742 = vst [vmem:[%s1511_s6 + $0x90] sm:$0xff] %v1099_v23  ;;  %1120 = vpow2.f32 %v913_v13 }
 0x156   : > { %v1103_v25 = vpop.eup %1102  ;;  %741 = vst [vmem:[%s1511_s6 + $0x88] sm:$0xff] %v1101_v24  ;;  %1122 = vpow2.f32 %v915_v21 }
 0x157   : > { %v1105_v26 = vpop.eup %1104  ;;  %743 = vst [vmem:[%s1511_s6 + $0x98] sm:$0xff] %v1103_v25  ;;  %1124 = vpow2.f32 %v914_v14 }
 0x158   : > { %v1107_v27 = vpop.eup %1106  ;;  %744 = vst [vmem:[%s1511_s6 + $0xa0] sm:$0xff] %v1105_v26  ;;  %1126 = vpow2.f32 %v916_v18 }
 0x159   : > { %v1109_v28 = vpop.eup %1108  ;;  %746 = vst [vmem:[%s1511_s6 + $0xb0] sm:$0xff] %v1107_v27 }
 0x15a   : > { %v1111_v29 = vpop.eup %1110  ;;  %745 = vst [vmem:[%s1511_s6 + $0xa8] sm:$0xff] %v1109_v28 }
 0x15b   : > { %v1113_v30 = vpop.eup %1112  ;;  %747 = vst [vmem:[%s1511_s6 + $0xb8] sm:$0xff] %v1111_v29 }
 0x15c   : > { %v1115_v31 = vpop.eup %1114  ;;  %748 = vst [vmem:[%s1511_s6 + $0xc0] sm:$0xff] %v1113_v30 }
 0x15d   : > { %v1117_v32 = vpop.eup %1116  ;;  %750 = vst [vmem:[%s1511_s6 + $0xd0] sm:$0xff] %v1115_v31 }
 0x15e   : > { %v1119_v33 = vpop.eup %1118  ;;  %v653_v34 = vadd.f32 1.0, %v1117_v32 }
 0x15f   : > { %v1121_v35 = vpop.eup %1120  ;;  %v655_v36 = vadd.f32 1.0, %v1119_v33 }
 0x160   : > { %v1123_v37 = vpop.eup %1122  ;;  %1128 = vrcp.f32 %v653_v34  ;;  %v656_v38 = vadd.f32 1.0, %v1121_v35 }
 0x161   : > { %v1125_v39 = vpop.eup %1124  ;;  %1130 = vrcp.f32 %v655_v36  ;;  %v658_v40 = vadd.f32 1.0, %v1123_v37 }
 0x162   : > { %v1127_v41 = vpop.eup %1126  ;;  %1132 = vrcp.f32 %v656_v38  ;;  %v657_v42 = vadd.f32 1.0, %v1125_v39 }
 0x163   : > { %1134 = vrcp.f32 %v658_v40  ;;  %v659_v43 = vadd.f32 1.0, %v1127_v41 }
 0x164   : > { %1136 = vrcp.f32 %v657_v42 }
 0x165   : > { %1138 = vrcp.f32 %v659_v43 }
 0x16a   : > { %v1129_v44 = vpop.eup %1128 }
 0x16b   : > { %v1131_v45 = vpop.eup %1130  ;;  %749 = vst [vmem:[%s1511_s6 + $0xc8] sm:$0xff] %v1129_v44 }
 0x16c   : > { %v1133_v46 = vpop.eup %1132  ;;  %751 = vst [vmem:[%s1511_s6 + $0xd8] sm:$0xff] %v1131_v45 }
 0x16d   : > { %v1135_v47 = vpop.eup %1134  ;;  %752 = vst [vmem:[%s1511_s6 + $0xe0] sm:$0xff] %v1133_v46 }
 0x16e   : > { %v1137_v48 = vpop.eup %1136  ;;  %754 = vst [vmem:[%s1511_s6 + $0xf0] sm:$0xff] %v1135_v47 }
 0x16f   : > { %v1139_v49 = vpop.eup %1138  ;;  %753 = vst [vmem:[%s1511_s6 + $0xe8] sm:$0xff] %v1137_v48 }
 0x170   : > { %755 = vst [vmem:[%s1511_s6 + $0xf8] sm:$0xff] %v1139_v49 }
 0x171   : > { %1183 = shalt.err (!%p1180_p3)
}
 0x172   : > { %s1184_s7 = scalar_lea.hbm %s1565_s28, 4096  ;;  %s1188_s21 = scalar_lea.hbm %s1623_s3, 8192 }
 0x173   : > { %p1185_p4 = scmp.ne.s32.totalorder %s1565_s28, %s1184_s7  ;;  %p1189_p12 = scmp.lt.u32.totalorder %s1565_s28, %s1623_s3 }
 0x174   : > { %p1190_p2 = scmp.lt.u32.totalorder %s1188_s21, %s1184_s7  ;;  %p1192_p8 = scmp.lt.u32.totalorder %s1184_s7, %s1565_s28 }
 0x175   : > { %p1186_p6 = pnand %p1185_p4, %p1630_p9 }
 0x176   : > { %p1191_p5 = por %p1190_p2, %p1189_p12 }
 0x177   : > { %p1187_p7 = pneg %p1186_p6 }
 0x178   : > { %p1193_p11 = por %p1192_p8, %p1191_p5 }
 0x17a   : > { %p1194_p0 = pnand %p1193_p11, %p1187_p7 }
 0x17c   : > { %1197 = shalt.err (!%p1194_p0)
}
 0x17d   : > { %s1261_s6 = smov 512   ;;  %s1262_s8 = smov 1024  }
 0x17e   : > { %s1263_s10 = smov 32  }
 0x17f   : > { %942 = dma.vmem_to_hbm [thread:$0]  (%p1630_p9), %s1568_s9, 4096, %s1565_s28, %s757_s15, %s1261_s6, %s1262_s8, %s1263_s10  }
 0x180 PF: > { %s787_s23 = sand.u32 1, %s1232_s12   ;;  %p1631_p10 = scmp.ne.s32.totalorder %s1628_s27, 0 }
 0x181   : > { %p1632_p13 = scmp.ge.s32.totalorder %s1252_s17, 2  ;;  %s788_s29 = scalar_lea.sflag [#allocation4], %s787_s23 }
 0x183   : > { %p949_p1 = pnand %p1632_p13, %p1631_p10 }
 0x185   : > { %1227 = dma.done.wait (!%p949_p1), %s788_s29, 4096  }
 0x186   : > { %1229 = vsyncadd (!%p949_p1), %s788_s29, 4294963200  ;;  %s19_s17 = sadd.s32 1, %s1252_s17   ;;  %s1633_s12 = smov %s1236_s13 }
 0x187   : > { %p16_p3 = scmp.ge.s32.totalorder %s19_s17, 4   ;;  %s1634_s13 = smov %s1240_s14 }
 0x188   : > { %s1635_s14 = smov %s1340_s26  ;;  %s1636_s15 = smov %s1248_s16 }
 0x189   : > { %s1637_s16 = smov %s1639_s20  ;;  %18 = sbr.rel (!%p16_p3) target bundleno = 6 (0x6), region = 77 }
 0x190   :  { %793 = vsyncpa [#allocation3], 1 }
 0x191   :  { %795 = vsyncpa [#allocation3 + $0x1], 1 }
 0x192   :  { %796 = vsyncpa [#allocation4], 1 }
 0x193   :  { %798 = vsyncpa [#allocation4 + $0x1], 1 }

</bundles_post_ra>
